<compile_context>
chip_gen: v7x
topology: tpu7x:2x2x1
jax: 0.10.0
libtpu: 0.0.40
codegen_flags: <defaults>
</compile_context>

<pallas_src>
import math

import jax
import jax.numpy as jnp
from jax import lax
from jax.experimental import pallas as pl
from jax.experimental.pallas import tpu as pltpu

LANES = 128
TILE_BYTES = 4 * 1024 * 1024   # per-input, per-grid-step DMA byte budget
SUB_ROWS = 1024                # in-kernel compute sub-chunk (bounds VMEM temps)
SMALL_N = 512                  # below this, plain jnp beats a kernel launch
_LN2 = math.log(2.0)


def _stable_bce(x, t):
    """max(x,0) - x*t + log(1+exp(-|x|))  ==  PyTorch stable BCE-with-logits."""
    x = x.astype(jnp.float32)
    t = t.astype(jnp.float32)
    return jnp.maximum(x, 0.0) - x * t + jnp.log(1.0 + jnp.exp(-jnp.abs(x)))


def _make_kernel(rows, row_block, sub_rows, tiles, tiles_per_chunk, n_chunks):
    n_sub = row_block // sub_rows
    rem_last = rows - (tiles - 1) * row_block     # valid rows in the final tile
    has_partial = rem_last != row_block           # final tile is a partial block
    has_dummy = n_chunks * tiles_per_chunk != tiles  # surplus grid step exists

    def accumulate(x_ref, t_ref, acc_ref, masked):
        def body(j, carry):
            start = j * sub_rows
            if n_sub > 1:
                start = pl.multiple_of(start, sub_rows)
            x = x_ref[pl.ds(start, sub_rows), :].astype(jnp.float32)
            t = t_ref[pl.ds(start, sub_rows), :].astype(jnp.float32)
            ce = jnp.maximum(x, 0.0) - x * t + jnp.log(1.0 + jnp.exp(-jnp.abs(x)))
            if masked:
                row = j * sub_rows + lax.broadcasted_iota(
                    jnp.int32, (sub_rows, LANES), 0)
                ce = jnp.where(row < rem_last, ce, 0.0)
            acc_ref[...] += ce
            return carry
        lax.fori_loop(0, n_sub, body, 0)

    def kernel(x_ref, t_ref, out_ref, acc_ref):
        c = pl.program_id(0)
        i = pl.program_id(1)
        tile_idx = c * tiles_per_chunk + i

        @pl.when(i == 0)
        def _init():
            acc_ref[...] = jnp.zeros_like(acc_ref)

        if has_partial:
            @pl.when(tile_idx < tiles - 1)
            def _bulk():
                accumulate(x_ref, t_ref, acc_ref, masked=False)

            @pl.when(tile_idx == tiles - 1)
            def _edge():  # only the final (partial) tile pays the mask cost
                accumulate(x_ref, t_ref, acc_ref, masked=True)
        elif has_dummy:
            @pl.when(tile_idx < tiles)
            def _valid():
                accumulate(x_ref, t_ref, acc_ref, masked=False)
        else:
            accumulate(x_ref, t_ref, acc_ref, masked=False)

        @pl.when(i == tiles_per_chunk - 1)
        def _finalize():
            out_ref[0, 0] = jnp.sum(acc_ref[...])

    return kernel


@jax.jit
def loss_classi(output, label):
    """Pallas-TPU equivalent of Loss_classi()(output, label, '1')."""
    assert output.shape == label.shape, (
        "Target size must be the same as input size")

    n_elem = output.size  # static under jit

    # Tiny inputs: kernel launch + pipeline warm-up dominates -> plain jnp.
    if n_elem < SMALL_N:
        return jnp.mean(_stable_bce(output, label))

    x = output.reshape(-1)   # native dtype all the way to VMEM
    t = label.reshape(-1)

    # Lane-ragged sizes only: pad by < 128 elements; each padded (x=0,t=0)
    # entry contributes exactly log(2), removed analytically below.
    pad = (-n_elem) % LANES
    if pad:
        x = jnp.pad(x, (0, pad))
        t = jnp.pad(t, (0, pad))

    rows = (n_elem + pad) // LANES
    x2 = x.reshape(rows, LANES)
    t2 = t.reshape(rows, LANES)

    # Byte-budgeted tile: ~4 MiB per input per grid step (in native dtype).
    itemsize = max(output.dtype.itemsize, label.dtype.itemsize)
    budget_rows = max(8, TILE_BYTES // (LANES * itemsize))  # 8192 f32, 16384 bf16
    row_block = min(budget_rows, rows)

    tiles = -(-rows // row_block)
    n_chunks = 2 if tiles >= 2 else 1          # v7x: one chunk per TensorCore
    tiles_per_chunk = -(-tiles // n_chunks)

    # Inner sub-chunk: bounds f32 temporaries / accumulator to ~0.5 MiB.
    sub_rows = SUB_ROWS if row_block % SUB_ROWS == 0 else row_block

    if n_chunks * tiles_per_chunk == tiles:
        def in_index(c, i):
            return (c * tiles_per_chunk + i, 0)
    else:
        # Surplus step re-reads the last real tile; its accumulation is
        # skipped inside the kernel (avoids padding a whole extra tile).
        def in_index(c, i):
            return (jnp.minimum(c * tiles_per_chunk + i, tiles - 1), 0)

    tile_spec = pl.BlockSpec((row_block, LANES), in_index)

    partials = pl.pallas_call(
        _make_kernel(rows, row_block, sub_rows, tiles, tiles_per_chunk,
                     n_chunks),
        out_shape=jax.ShapeDtypeStruct((n_chunks, 1), jnp.float32),
        grid_spec=pltpu.PrefetchScalarGridSpec(
            num_scalar_prefetch=0,
            grid=(n_chunks, tiles_per_chunk),
            in_specs=[tile_spec, tile_spec],
            out_specs=pl.BlockSpec((1, 1), lambda c, i: (c, 0),
                                   memory_space=pltpu.SMEM),
            scratch_shapes=[pltpu.VMEM((sub_rows, LANES), jnp.float32)],
        ),
        compiler_params=pltpu.CompilerParams(
            # "parallel" chunk axis -> 2-TC split on v7x (serial elsewhere).
            dimension_semantics=("parallel", "arbitrary"),
            # 2 inputs x 2 pipeline buffers x 4 MiB + ~1 MiB scratch/temps:
            # exceeds v5e's 16 MiB default scoped-VMEM limit, so raise it.
            vmem_limit_bytes=40 * 1024 * 1024),
    )(x2, t2)

    total = jnp.sum(partials)
    if pad:
        total = total - jnp.float32(pad * _LN2)
    # reduction='elementwise_mean' -> mean over the real elements.
    return total / jnp.float32(n_elem)


def _reference(output, label):
    x = output.astype(jnp.float32)
    t = label.astype(jnp.float32)
    max_val = jnp.maximum(-x, 0.0)
    ce = x - x * t + max_val + jnp.log(
        jnp.exp(-max_val) + jnp.exp(-x - max_val))
    return jnp.mean(ce)


if __name__ == "__main__":
    key = jax.random.PRNGKey(0)
    ks = jax.random.split(key, 8)

    def check(name, out, lab, rtol=1e-5, atol=1e-5):
        got = jax.block_until_ready(loss_classi(out, lab))
        ref = _reference(out, lab)
        assert jnp.allclose(got, ref, rtol=rtol, atol=atol), (name, got, ref)

    # 1) Classification-logit map [B, C, H, W]: lane-aligned, single tile.
    B, C, H, W = 2, 4, 16, 16
    out1 = jax.random.normal(ks[0], (B, C, H, W), dtype=jnp.float32)
    lab1 = (jax.random.uniform(ks[1], (B, C, H, W)) > 0.5).astype(jnp.float32)
    check("aligned_f32", out1, lab1)

    # 2) Ragged element count: minimal (<128) pad + analytic log(2) correction.
    out2 = jax.random.normal(ks[2], (3, 5, 7, 9), dtype=jnp.float32)
    lab2 = (jax.random.uniform(ks[3], (3, 5, 7, 9)) > 0.5).astype(jnp.float32)
    check("ragged_f32", out2, lab2)

    # 3) bf16 logits: native-dtype HBM/VMEM tiles, f32 math inside the kernel.
    check("bf16_logits", out1.astype(jnp.bfloat16), lab1, rtol=1e-4, atol=1e-4)

    # 4) Multi-tile: 2-chunk split, odd tile count (dummy step), partial last
    #    tile (pl.when-gated masked edge), 8-deep in-kernel sub-chunk loop.
    out4 = jax.random.normal(ks[4], (2, 4, 2250, 128), dtype=jnp.float32)
    lab4 = (jax.random.uniform(ks[5], (2, 4, 2250, 128)) > 0.5).astype(
        jnp.float32)
    check("multitile_f32", out4, lab4, rtol=1e-4, atol=1e-5)

    # 5) Tiny input: plain-jnp fallback path.
    out5 = jax.random.normal(ks[6], (4, 8), dtype=jnp.float32)
    lab5 = (jax.random.uniform(ks[7], (4, 8)) > 0.5).astype(jnp.float32)
    check("tiny_fallback", out5, lab5)

    print("KERNEL_OK")
</pallas_src>

<mosaic_0001>
module attributes {stable_mosaic.version = 11 : i64} {
  func.func @kernel(%arg0: i32, %arg1: i32, %arg2: memref<16x128xf32, #tpu.memory_space<vmem>>, %arg3: memref<16x128xf32, #tpu.memory_space<vmem>>, %arg4: memref<1x1xf32, #tpu.memory_space<smem>>, %arg5: memref<16x128xf32, #tpu.memory_space<vmem>>) attributes {dimension_semantics = [#tpu.dimension_semantics<parallel>, #tpu.dimension_semantics<arbitrary>], iteration_bounds = array<i64: 1, 1>, scalar_prefetch = 0 : i64, scratch_operands = 1 : i64, tpu.core_type = #tpu.core_type<tc>, window_params = [{transform_indices = @transform_0, window_bounds = array<i64: 16, 128>}, {transform_indices = @transform_1, window_bounds = array<i64: 16, 128>}, {transform_indices = @transform_2, window_bounds = array<i64: 1, 1>}]} {
    %c0_i32 = arith.constant 0 : i32
    %0 = arith.cmpi eq, %arg1, %c0_i32 : i32
    %1 = arith.extui %0 : i1 to i32
    %c0_i32_0 = arith.constant 0 : i32
    %2 = arith.cmpi ne, %1, %c0_i32_0 : i32
    scf.if %2 {
      %cst_11 = arith.constant 0.000000e+00 : f32
      %26 = vector.broadcast %cst_11 : f32 to vector<16x128xf32>
      %c0_12 = arith.constant 0 : index
      %c0_13 = arith.constant 0 : index
      %27 = vector.load %arg5[%c0_12, %c0_13] : memref<16x128xf32, #tpu.memory_space<vmem>>, vector<16x128xf32>
      tpu.vector_store %arg5[%c0_12, %c0_13], %26 {strides = array<i32>} : memref<16x128xf32, #tpu.memory_space<vmem>>, vector<16x128xf32>,
    } else {
    }
    %c0_i32_1 = arith.constant 0 : i32
    %c16_i32 = arith.constant 16 : i32
    %3 = arith.muli %c0_i32_1, %c16_i32 : i32
    %4 = arith.index_cast %3 : i32 to index
    %c0 = arith.constant 0 : index
    %5 = vector.load %arg2[%4, %c0] : memref<16x128xf32, #tpu.memory_space<vmem>>, vector<16x128xf32>
    %6 = arith.index_cast %3 : i32 to index
    %c0_2 = arith.constant 0 : index
    %7 = vector.load %arg3[%6, %c0_2] : memref<16x128xf32, #tpu.memory_space<vmem>>, vector<16x128xf32>
    %cst = arith.constant 0.000000e+00 : f32
    %8 = vector.broadcast %cst : f32 to vector<16x128xf32>
    %9 = arith.maximumf %5, %8 : vector<16x128xf32>
    %10 = arith.mulf %5, %7 : vector<16x128xf32>
    %11 = arith.subf %9, %10 : vector<16x128xf32>
    %12 = math.absf %5 : vector<16x128xf32>
    %cst_3 = arith.constant 0.000000e+00 : f32
    %13 = vector.broadcast %cst_3 : f32 to vector<16x128xf32>
    %14 = arith.subf %13, %12 : vector<16x128xf32>
    %15 = math.exp %14 : vector<16x128xf32>
    %cst_4 = arith.constant 1.000000e+00 : f32
    %16 = vector.broadcast %cst_4 : f32 to vector<16x128xf32>
    %17 = arith.addf %16, %15 : vector<16x128xf32>
    %18 = math.log %17 : vector<16x128xf32>
    %19 = arith.addf %11, %18 : vector<16x128xf32>
    %c0_5 = arith.constant 0 : index
    %c0_6 = arith.constant 0 : index
    %20 = vector.load %arg5[%c0_5, %c0_6] : memref<16x128xf32, #tpu.memory_space<vmem>>, vector<16x128xf32>
    %21 = arith.addf %20, %19 : vector<16x128xf32>
    %c0_7 = arith.constant 0 : index
    %c0_8 = arith.constant 0 : index
    %22 = vector.load %arg5[%c0_7, %c0_8] : memref<16x128xf32, #tpu.memory_space<vmem>>, vector<16x128xf32>
    tpu.vector_store %arg5[%c0_7, %c0_8], %21 {strides = array<i32>} : memref<16x128xf32, #tpu.memory_space<vmem>>, vector<16x128xf32>,
    %c1_i32 = arith.constant 1 : i32
    %c0_i32_9 = arith.constant 0 : i32
    %23 = arith.cmpi eq, %arg1, %c0_i32_9 : i32
    %24 = arith.extui %23 : i1 to i32
    %c0_i32_10 = arith.constant 0 : i32
    %25 = arith.cmpi ne, %24, %c0_i32_10 : i32
    scf.if %25 {
      %c0_11 = arith.constant 0 : index
      %c0_12 = arith.constant 0 : index
      %26 = vector.load %arg5[%c0_11, %c0_12] : memref<16x128xf32, #tpu.memory_space<vmem>>, vector<16x128xf32>
      %27 = vector.shape_cast %26 : vector<16x128xf32> to vector<1x16x128xf32>
      %cst_13 = arith.constant dense<0.000000e+00> : vector<1xf32>
      %28 = vector.multi_reduction <add>, %27, %cst_13 [1, 2] : vector<1x16x128xf32> to vector<1xf32>
      %29 = vector.shape_cast %28 : vector<1xf32> to vector<1x1x1xf32>
      %30 = vector.extract %29[0, 0, 0] : f32 from vector<1x1x1xf32>
      %c0_14 = arith.constant 0 : index
      %c0_15 = arith.constant 0 : index
      %31 = memref.load %arg4[%c0_14, %c0_15] : memref<1x1xf32, #tpu.memory_space<smem>>
      memref.store %30, %arg4[%c0_14, %c0_15] : memref<1x1xf32, #tpu.memory_space<smem>>
    } else {
    }
    return
  }
  func.func @transform_0(%arg0: i32, %arg1: i32) -> (i32, i32) {
    %c1_i32 = arith.constant 1 : i32
    %0 = arith.muli %arg0, %c1_i32 : i32
    %1 = arith.addi %0, %arg1 : i32
    %c0_i32 = arith.constant 0 : i32
    %c0_i32_0 = arith.constant 0 : i32
    return %1, %c0_i32 : i32, i32
  }
  func.func @transform_1(%arg0: i32, %arg1: i32) -> (i32, i32) {
    %c1_i32 = arith.constant 1 : i32
    %0 = arith.muli %arg0, %c1_i32 : i32
    %1 = arith.addi %0, %arg1 : i32
    %c0_i32 = arith.constant 0 : i32
    %c0_i32_0 = arith.constant 0 : i32
    return %1, %c0_i32 : i32, i32
  }
  func.func @transform_2(%arg0: i32, %arg1: i32) -> (i32, i32) {
    %c0_i32 = arith.constant 0 : i32
    %c0_i32_0 = arith.constant 0 : i32
    return %arg0, %c0_i32 : i32, i32
  }
}

</mosaic_0001>

<bundles_post_ra>
// kernel: loss_classi.1
= control target key start
LH: loop header
LB: loop body
LE: loop exit
PB: predicated region body
PF: predicated region fallthrough
CT: control target
= control target key end

     0   :  { %s199_s0 = inlined_call_operand.vmem [shape: f32[16,128], index: 0, kind: input, shape index: {}]   ;;  %s200_s1 = inlined_call_operand.vmem [shape: f32[16,128], index: 1, kind: input, shape index: {}]   ;;  %s201_s2 = inlined_call_operand.hbm [shape: f32[1,1], index: 2, kind: output, shape index: {}]  }
   0x1   :  { %v62_v0 = vld [vmem:[%s199_s0] sm:$0xff]  ;;  %v63_v1 = vld [vmem:[%s199_s0 + $0x8] sm:$0xff] }
   0x2   :  { %v72_v2 = vand.u32 2147483647, %v62_v0  ;;  %v73_v3 = vand.u32 2147483647, %v63_v1 }
   0x3   :  { %7 = vsyncpa [#allocation4], 0  ;;  %v64_v12 = vld [vmem:[%s200_s1] sm:$0xff]  ;;  %v65_v13 = vld [vmem:[%s200_s1 + $0x8] sm:$0xff]  ;;  %v66_v14 = vmax.f32 %v62_v0, 0.0  ;;  %v67_v16 = vmax.f32 %v63_v1, 0.0 }
   0x4   :  { %v74_v4 = vsub.f32 0.0, %v72_v2  ;;  %v75_v5 = vsub.f32 0.0, %v73_v3  ;;  %v68_v15 = vmul.f32 %v64_v12, %v62_v0  ;;  %v69_v17 = vmul.f32 %v65_v13, %v63_v1  ;;  %s147_s18 = scalar_lea.hbm %s201_s2, 16 }
   0x5   :  { %p148_p0 = scmp.ne.s32.totalorder %s201_s2, %s147_s18  ;;  %p151_p1 = scmp.lt.u32.totalorder %s147_s18, %s201_s2 }
   0x6   :  { %v76_v6 = vmul.f32 1.442695, %v74_v4  ;;  %v78_v7 = vmul.f32 1.442695, %v75_v5  ;;  %v70_v18 = vsub.f32 %v66_v14, %v68_v15  ;;  %v71_v20 = vsub.f32 %v67_v16, %v69_v17 }
   0x7   :  { %p153_p2 = pnand %p151_p1, %p148_p0 }
   0x8   :  { %139 = vpow2.f32 %v76_v6 }
   0x9   :  { %141 = vpow2.f32 %v78_v7 }
  0x12   :  { %v140_v8 = vpop.eup %139 }
  0x13   :  { %v142_v9 = vpop.eup %141  ;;  %v80_v10 = vadd.f32 1.0, %v140_v8 }
  0x14   :  { %v81_v11 = vadd.f32 1.0, %v142_v9 }
  0x15   :  { %143 = vlog2.f32 %v80_v10 }
  0x16   :  { %145 = vlog2.f32 %v81_v11 }
  0x1f   :  { %v144_v19 = vpop.eup %143 }
  0x20   :  { %v146_v21 = vpop.eup %145  ;;  %v83_v22 = vmul.f32 0.6931472, %v144_v19 }
  0x21   :  { %v85_v23 = vmul.f32 0.6931472, %v146_v21 }
  0x22   :  { %v86_v24 = vadd.f32 %v83_v22, %v70_v18 }
  0x23   :  { %v87_v25 = vadd.f32 %v85_v23, %v71_v20 }
  0x25   :  { %v99_v26 = vadd.f32 %v87_v25, %v86_v24 }
  0x27   :  { %100 = vadd.xlane.f32.xlu0 %v99_v26 }
  0xb4   :  { %v101_v27 = vpop.xlane.xlu0 %100 }
  0xb5   :  { %v102_v28 = vrot.slane %v101_v27, 4 }
  0xb7   :  { %v103_v29 = vadd.f32 %v102_v28, %v101_v27 }
  0xb9   :  { %v104_v30 = vrot.slane %v103_v29, 2 }
  0xbb   :  { %v105_v31 = vadd.f32 %v104_v30, %v103_v29 }
  0xbd   :  { %v106_v32 = vrot.slane %v105_v31, 1 }
  0xbf   :  { %v107_v33 = vadd.f32 %v106_v32, %v105_v31 }
  0xc1   :  { %136 = vpush %v107_v33 }
  0xf2   :  { %s137_s1 = spop %136 }
  0xf3   :  { %110 = sst [smem:[#allocation3]] %s137_s1 }
  0xf4   :  { %156 = shalt.err (!%p153_p2)
}
  0xf5   :  { %s159_s23 = smov [#allocation3]  }
  0xf6   :  { %118 = dma.smem_to_hbm %s159_s23, 16, %s201_s2, [#allocation4]  }
  0xf7   :  { %157 = dma.done.wait [#allocation4], 16  }
  0xf8   :  { %158 = vsyncadd [#allocation4], 4294967280 }
  0xf9   :  { %122 = sfence }
  0xfa   :  { %123 = vsyncpa [#allocation4], 1 }

</bundles_post_ra>
